<compile_context>
chip_gen: v5e
topology: v5e:2x2
jax: 0.10.0
libtpu: 0.0.40
codegen_flags: <defaults>
</compile_context>

<pallas_src>
import functools

import jax
import jax.numpy as jnp
from jax import lax
from jax.experimental import pallas as pl
from jax.experimental.pallas import tpu as pltpu


def _metacog_kernel(x_ref, w1_ref, b1_ref, w2_ref, b2_ref, o_ref):
    """sigmoid( gelu(x @ W1 + b1) . w2 + b2 ) for one batch tile."""
    x = x_ref[...]                                   # [tb, H]  (f32 or bf16)
    w1 = w1_ref[...]                                 # [H,  I]  (f32 or bf16)

    # hidden_transform on the MXU, f32 accumulation.
    h = jnp.dot(x, w1, preferred_element_type=jnp.float32)
    h = h + b1_ref[...].astype(jnp.float32)          # [tb, I]

    # Exact GELU (erf form, matches torch.nn.GELU() default), f32 on the VPU.
    g = 0.5 * h * (1.0 + lax.erf(h * jnp.float32(0.7071067811865476)))

    # confidence_head: N=1 matvec done as VPU multiply + XLU lane reduction
    # (w2 is lane-dense [1, I] instead of a padded [I, 1] MXU operand).
    logit = jnp.sum(g * w2_ref[...].astype(jnp.float32), axis=-1, keepdims=True)
    logit = logit + b2_ref[0].astype(jnp.float32)    # scalar bias from SMEM

    o_ref[...] = jax.nn.sigmoid(logit).astype(o_ref.dtype)


def _pick_vmem_limit_bytes():
    """~3/4 of physical VMEM, capped at 100 MiB (v5e/v6e ≈96 MiB, v7x ≈48 MiB)."""
    try:
        cap = int(pltpu.get_tpu_info().vmem_capacity_bytes)
    except Exception:
        cap = 64 * 1024 * 1024
    return max(32 * 1024 * 1024, min((cap * 3) // 4, 100 * 1024 * 1024))


@functools.partial(jax.jit, static_argnames=("block_b", "compute_dtype"))
def metacognition_forward(hidden_state, w1_t, b1, w2_row, b2, *,
                          block_b=256, compute_dtype=None):
    """Forward pass.

    hidden_state: [B, H]
    w1_t:         [H, I]   (hidden_transform weight, pre-transposed)
    b1:           [1, I]
    w2_row:       [1, I]   (confidence_head weight as a lane-dense row)
    b2:           [1]      (scalar bias, kept in SMEM)
    compute_dtype: optional dtype (e.g. jnp.bfloat16) for the MXU operands
                   x / W1; activations & elementwise math stay f32.
    """
    B, H = hidden_state.shape
    I = w1_t.shape[1]
    out_dtype = hidden_state.dtype

    if compute_dtype is not None:
        hidden_state = hidden_state.astype(compute_dtype)
        w1_t = w1_t.astype(compute_dtype)

    # Batch tiling: one resident set of weights, x/out tiles stream.
    tb = min(int(block_b), B)
    num_blocks = pl.cdiv(B, tb)
    Bp = num_blocks * tb
    if Bp != B:
        hidden_state = jnp.pad(hidden_state, ((0, Bp - B), (0, 0)))

    out = pl.pallas_call(
        _metacog_kernel,
        out_shape=jax.ShapeDtypeStruct((Bp, 1), out_dtype),
        grid=(num_blocks,),
        in_specs=[
            pl.BlockSpec((tb, H), lambda i: (i, 0)),        # x tile (streamed)
            pl.BlockSpec((H, I), lambda i: (0, 0)),         # W1 (resident)
            pl.BlockSpec((1, I), lambda i: (0, 0)),         # b1 (resident)
            pl.BlockSpec((1, I), lambda i: (0, 0)),         # w2 row (resident)
            pl.BlockSpec(memory_space=pltpu.MemorySpace.SMEM),  # b2 scalar
        ],
        out_specs=pl.BlockSpec((tb, 1), lambda i: (i, 0)),
        compiler_params=pltpu.CompilerParams(
            dimension_semantics=("parallel",),
            vmem_limit_bytes=_pick_vmem_limit_bytes(),
        ),
    )(hidden_state, w1_t, b1, w2_row, b2)

    return out[:B]


def init_params(key, hidden_dim, intermediate_dim=None, dtype=jnp.float32):
    """Deterministic nn.Linear-style init (uniform(-1/sqrt(fan_in), ...))."""
    if intermediate_dim is None:
        intermediate_dim = max(hidden_dim // 2, 1)
    k1, k2, k3, k4 = jax.random.split(key, 4)
    bound1 = 1.0 / (hidden_dim ** 0.5)
    bound2 = 1.0 / (intermediate_dim ** 0.5)
    # hidden_transform weight stored pre-transposed: [H, I]
    w1_t = jax.random.uniform(k1, (hidden_dim, intermediate_dim), dtype,
                              minval=-bound1, maxval=bound1)
    b1 = jax.random.uniform(k2, (1, intermediate_dim), dtype,
                            minval=-bound1, maxval=bound1)
    # confidence_head weight stored as lane-dense row: [1, I]
    w2_row = jax.random.uniform(k3, (1, intermediate_dim), dtype,
                                minval=-bound2, maxval=bound2)
    b2 = jax.random.uniform(k4, (1,), dtype, minval=-bound2, maxval=bound2)
    return w1_t, b1, w2_row, b2


def _reference_forward(hidden_state, w1_t, b1, w2_row, b2):
    h = hidden_state.astype(jnp.float32) @ w1_t.astype(jnp.float32) + b1
    g = 0.5 * h * (1.0 + lax.erf(h / jnp.sqrt(2.0)))
    logit = g @ w2_row.T + b2
    return jax.nn.sigmoid(logit)


if __name__ == "__main__":
    key = jax.random.PRNGKey(0)
    k_x, k_p, k_x2, k_p2 = jax.random.split(key, 4)

    # --- Small-shape check, exact f32 path (single grid step). ---
    batch, hidden_dim = 8, 32
    x = jax.random.normal(k_x, (batch, hidden_dim), jnp.float32)
    params = init_params(k_p, hidden_dim)

    out = jax.block_until_ready(metacognition_forward(x, *params))
    ref = _reference_forward(x, *params)
    assert out.shape == (batch, 1), out.shape
    assert bool(jnp.all((out >= 0.0) & (out <= 1.0)))
    assert bool(jnp.allclose(out, ref, atol=1e-5, rtol=1e-5))

    # --- Grid path: batch > block (with padding) + bf16 MXU operands. ---
    batch2, hidden2 = 300, 128
    x2 = jax.random.normal(k_x2, (batch2, hidden2), jnp.float32)
    params2 = init_params(k_p2, hidden2)

    out2 = jax.block_until_ready(
        metacognition_forward(x2, *params2, block_b=128,
                              compute_dtype=jnp.bfloat16))
    ref2 = _reference_forward(x2, *params2)
    assert out2.shape == (batch2, 1), out2.shape
    assert bool(jnp.all((out2 >= 0.0) & (out2 <= 1.0)))
    assert bool(jnp.allclose(out2, ref2, atol=2e-2, rtol=2e-2))

    print("KERNEL_OK")
</pallas_src>

<mosaic_0001>
module attributes {stable_mosaic.version = 11 : i64} {
  func.func @_metacog_kernel(%arg0: i32, %arg1: memref<8x32xf32, #tpu.memory_space<vmem>>, %arg2: memref<32x16xf32, #tpu.memory_space<vmem>>, %arg3: memref<1x16xf32, #tpu.memory_space<vmem>>, %arg4: memref<1x16xf32, #tpu.memory_space<vmem>>, %arg5: memref<1xf32, #tpu.memory_space<smem>>, %arg6: memref<8x1xf32, #tpu.memory_space<vmem>>) attributes {dimension_semantics = [#tpu.dimension_semantics<parallel>], iteration_bounds = array<i64: 1>, scalar_prefetch = 0 : i64, scratch_operands = 0 : i64, tpu.core_type = #tpu.core_type<tc>, window_params = [{transform_indices = @transform_0, window_bounds = array<i64: 8, 32>}, {pipeline_mode = #tpu.pipeline_mode<synchronous>, transform_indices = @transform_1, window_bounds = array<i64: 32, 16>}, {pipeline_mode = #tpu.pipeline_mode<synchronous>, transform_indices = @transform_2, window_bounds = array<i64: 1, 16>}, {pipeline_mode = #tpu.pipeline_mode<synchronous>, transform_indices = @transform_3, window_bounds = array<i64: 1, 16>}, {transform_indices = @transform_4, window_bounds = array<i64: 1>}, {transform_indices = @transform_5, window_bounds = array<i64: 8, 1>}]} {
    %c0 = arith.constant 0 : index
    %c0_0 = arith.constant 0 : index
    %0 = vector.load %arg1[%c0, %c0_0] : memref<8x32xf32, #tpu.memory_space<vmem>>, vector<8x32xf32>
    %c0_1 = arith.constant 0 : index
    %c0_2 = arith.constant 0 : index
    %1 = vector.load %arg2[%c0_1, %c0_2] : memref<32x16xf32, #tpu.memory_space<vmem>>, vector<32x16xf32>
    %cst = arith.constant dense<0.000000e+00> : vector<8x16xf32>
    %2 = tpu.matmul %0, %1, %cst {dimension_numbers = #tpu.dot_dimension_numbers<[1], [0], [0], [1], [0, 0, 1, 1], [], []>} : vector<8x32xf32>, vector<32x16xf32>, vector<8x16xf32> -> vector<8x16xf32>
    %c0_3 = arith.constant 0 : index
    %c0_4 = arith.constant 0 : index
    %3 = vector.load %arg3[%c0_3, %c0_4] : memref<1x16xf32, #tpu.memory_space<vmem>>, vector<1x16xf32>
    %4 = vector.broadcast %3 : vector<1x16xf32> to vector<8x16xf32>
    %5 = arith.addf %2, %4 : vector<8x16xf32>
    %cst_5 = arith.constant 5.000000e-01 : f32
    %6 = vector.broadcast %cst_5 : f32 to vector<8x16xf32>
    %7 = arith.mulf %6, %5 : vector<8x16xf32>
    %cst_6 = arith.constant 0.707106769 : f32
    %8 = vector.broadcast %cst_6 : f32 to vector<8x16xf32>
    %9 = arith.mulf %5, %8 : vector<8x16xf32>
    %10 = math.erf %9 : vector<8x16xf32>
    %cst_7 = arith.constant 1.000000e+00 : f32
    %11 = vector.broadcast %cst_7 : f32 to vector<8x16xf32>
    %12 = arith.addf %11, %10 : vector<8x16xf32>
    %13 = arith.mulf %7, %12 : vector<8x16xf32>
    %c0_8 = arith.constant 0 : index
    %c0_9 = arith.constant 0 : index
    %14 = vector.load %arg4[%c0_8, %c0_9] : memref<1x16xf32, #tpu.memory_space<vmem>>, vector<1x16xf32>
    %15 = vector.broadcast %14 : vector<1x16xf32> to vector<8x16xf32>
    %16 = arith.mulf %13, %15 : vector<8x16xf32>
    %cst_10 = arith.constant dense<0.000000e+00> : vector<8xf32>
    %17 = vector.multi_reduction <add>, %16, %cst_10 [1] : vector<8x16xf32> to vector<8xf32>
    %18 = vector.shape_cast %17 : vector<8xf32> to vector<8x1xf32>
    %c0_11 = arith.constant 0 : index
    %19 = memref.load %arg5[%c0_11] : memref<1xf32, #tpu.memory_space<smem>>
    %20 = vector.broadcast %19 : f32 to vector<8x1xf32>
    %21 = arith.addf %18, %20 : vector<8x1xf32>
    %22 = arith.negf %21 : vector<8x1xf32>
    %23 = math.exp %22 : vector<8x1xf32>
    %cst_12 = arith.constant 1.000000e+00 : f32
    %24 = vector.broadcast %cst_12 : f32 to vector<8x1xf32>
    %25 = arith.addf %24, %23 : vector<8x1xf32>
    %26 = arith.divf %24, %25 : vector<8x1xf32>
    %c0_13 = arith.constant 0 : index
    %c0_14 = arith.constant 0 : index
    %27 = vector.load %arg6[%c0_13, %c0_14] : memref<8x1xf32, #tpu.memory_space<vmem>>, vector<8x1xf32>
    tpu.vector_store %arg6[%c0_13, %c0_14], %26 {strides = array<i32>} : memref<8x1xf32, #tpu.memory_space<vmem>>, vector<8x1xf32>,
    return
  }
  func.func @transform_0(%arg0: i32) -> (i32, i32) {
    %c0_i32 = arith.constant 0 : i32
    %c0_i32_0 = arith.constant 0 : i32
    return %arg0, %c0_i32 : i32, i32
  }
  func.func @transform_1(%arg0: i32) -> (i32, i32) {
    %c0_i32 = arith.constant 0 : i32
    %c0_i32_0 = arith.constant 0 : i32
    %c0_i32_1 = arith.constant 0 : i32
    return %c0_i32, %c0_i32_0 : i32, i32
  }
  func.func @transform_2(%arg0: i32) -> (i32, i32) {
    %c0_i32 = arith.constant 0 : i32
    %c0_i32_0 = arith.constant 0 : i32
    %c0_i32_1 = arith.constant 0 : i32
    return %c0_i32, %c0_i32_0 : i32, i32
  }
  func.func @transform_3(%arg0: i32) -> (i32, i32) {
    %c0_i32 = arith.constant 0 : i32
    %c0_i32_0 = arith.constant 0 : i32
    %c0_i32_1 = arith.constant 0 : i32
    return %c0_i32, %c0_i32_0 : i32, i32
  }
  func.func @transform_4(%arg0: i32) -> i32 {
    %c0_i32 = arith.constant 0 : i32
    %c0_i32_0 = arith.constant 0 : i32
    return %c0_i32 : i32
  }
  func.func @transform_5(%arg0: i32) -> (i32, i32) {
    %c0_i32 = arith.constant 0 : i32
    %c0_i32_0 = arith.constant 0 : i32
    return %arg0, %c0_i32 : i32, i32
  }
}

</mosaic_0001>

<bundles_post_ra>
// kernel: metacognition_forward.1
= control target key start
LH: loop header
LB: loop body
LE: loop exit
PB: predicated region body
PF: predicated region fallthrough
CT: control target
= control target key end

     0   :  { %vm30_vm0 = vcmask 261120   ;;  %vm103_vm5 = vcmask 130048   ;;  %vm129_vm9 = vcmask 7168   ;;  %s203_s1 = inlined_call_operand.vmem [shape: f32[32,16], index: 1, kind: input, shape index: {}]   ;;  %s204_s2 = inlined_call_operand.vmem [shape: f32[1,16], index: 2, kind: input, shape index: {}]   ;;  %s205_s0 = inlined_call_operand.vmem [shape: f32[8,32], index: 0, kind: input, shape index: {}]   ;;  %s206_s3 = inlined_call_operand.vmem [shape: f32[1,16], index: 3, kind: input, shape index: {}]   ;;  %s207_s4 = inlined_call_operand.<no memory space> [shape: f32[1], index: 4, kind: input, shape index: {}]   ;;  %s208_s5 = inlined_call_operand.vmem [shape: f32[8,1], index: 5, kind: output, shape index: {}]  }
   0x1   :  { %v25_v0 = vld [vmem:[%s203_s1 + $0x18] sm:$0xff]  ;;  %v24_v1 = vld [vmem:[%s203_s1 + $0x10] sm:$0xff]  ;;  %v23_v2 = vld [vmem:[%s203_s1 + $0x8] sm:$0xff]  ;;  %v108_v50 = vstv %s207_s4 }
   0x2   :  { %46 = vmatpush.msra.mxu0 %v25_v0  ;;  %v22_v3 = vld [vmem:[%s203_s1] sm:$0xff] }
   0x3   :  { %v21_v4 = vld [vmem:[%s205_s0] sm:$0xff] }
   0x4   :  { %47 = vmatpush.msra.mxu0 %v24_v1  ;;  %v138_v5 = vld [vmem:[%s204_s2] ss:$0 sm:$0xff] }
   0x5   :  { %v139_v46 = vld [vmem:[%s206_s3] ss:$0 sm:$0xff] }
   0x6   :  { %48 = vmatpush.msra.mxu0 %v23_v2 }
   0x8   :  { %49 = vmatpush.msra.mxu0 %v22_v3 }
   0x9   :  { %135 = vmatmul.msk.f32.vlgmr.msra.gmra.mxu0 %vm30_vm0, %v21_v4 }
  0x86   :  { %v51_v6 = vpop.f32.mrf.mxu0 }
  0x87   :  { %v52_v7 = vadd.f32 %v138_v5, %v51_v6 }
  0x89   :  { %v55_v8 = vmul.f32 0.70710677, %v52_v7  ;;  %v54_v44 = vmul.f32 0.5, %v52_v7 }
  0x8b   :  { %v56_v9 = vmul.f32 %v55_v8, %v55_v8 }
  0x8d   :  { %v57_v10 = vmin.f32 %v56_v9, 16.0 }
  0x8f   :  { %v58_v11 = vmul.f32 2.1237322e-06, %v57_v10  ;;  %v69_v12 = vmul.f32 3.8918573e-05, %v57_v10 }
  0x91   :  { %v59_v13 = vadd.f32 0.00028619796, %v58_v11  ;;  %v70_v14 = vadd.f32 0.001143296, %v69_v12 }
  0x93   :  { %v60_v15 = vmul.f32 %v59_v13, %v57_v10  ;;  %v71_v16 = vmul.f32 %v70_v14, %v57_v10 }
  0x95   :  { %v72_v17 = vadd.f32 0.014752088, %v71_v16  ;;  %v61_v18 = vadd.f32 0.0036580483, %v60_v15 }
  0x97   :  { %v73_v19 = vmul.f32 %v72_v17, %v57_v10  ;;  %v62_v21 = vmul.f32 %v61_v18, %v57_v10 }
  0x99   :  { %v74_v20 = vadd.f32 0.112945676, %v73_v19  ;;  %v63_v24 = vadd.f32 0.05243302, %v62_v21 }
  0x9b   :  { %v75_v22 = vmul.f32 %v74_v20, %v57_v10  ;;  %v64_v27 = vmul.f32 %v63_v24, %v57_v10 }
  0x9d   :  { %v76_v23 = vadd.f32 0.4994258, %v75_v22  ;;  %v65_v28 = vadd.f32 0.18741608, %v64_v27 }
  0x9f   :  { %v77_v25 = vmul.f32 %v76_v23, %v57_v10  ;;  %v66_v30 = vmul.f32 %v65_v28, %v57_v10 }
  0xa1   :  { %v78_v26 = vadd.f32 1.0, %v77_v25  ;;  %v67_v34 = vadd.f32 1.1283791, %v66_v30 }
  0xa3   :  { %140 = vrcp.f32 %v78_v26  ;;  %v90_v33 = vand.u32 2147483648, %v78_v26  ;;  %v88_v36 = vand.u32 2147483647, %v78_v26  ;;  %vm84_vm2 = vweird.f32 %v78_v26 }
  0xa4   :  { %v68_v39 = vmul.f32 %v67_v34, %v55_v8 }
  0xa5   :  { %v91_v38 = vor.u32 1.1754944e-38, %v90_v33  ;;  %vm89_vm4 = vcmp.eq.f32.partialorder %v88_v36, 8.507059e+37 }
  0xa9   :  { %v141_v29 = vpop.eup %140 }
  0xaa   :  { %v80_v31 = vmul.f32 %v141_v29, %v78_v26  ;;  %vm85_vm1 = vweird.f32 %v141_v29 }
  0xab   :  { %vm86_vm3 = vmor %vm84_vm2, %vm85_vm1 }
  0xac   :  { %v81_v32 = vsub.f32 1.0, %v80_v31 }
  0xae   :  { %v82_v35 = vmul.f32 %v141_v29, %v81_v32 }
  0xb0   :  { %v83_v37 = vadd.f32 %v141_v29, %v82_v35 }
  0xb2   :  { %v87_v40 = vsel %vm86_vm3, %v141_v29, %v83_v37 }
  0xb3   :  { %v92_v41 = vsel %vm89_vm4, %v91_v38, %v87_v40 }
  0xb4   :  { %v93_v42 = vmul.f32 %v92_v41, %v68_v39 }
  0xb6   :  { %v136_v43 = vclamps-f32 %v93_v42, 1.0 }
  0xb8   :  { %v96_v45 = vadd.f32 1.0, %v136_v43 }
  0xba   :  { %v97_v47 = vmul.f32 %v96_v45, %v54_v44 }
  0xbc   :  { %v102_v48 = vmul.f32 %v139_v46, %v97_v47 }
  0xbe   :  { %v104_v49 = vsel %vm103_vm5, %v102_v48, 0.0 }
  0xbf   :  { %105 = vadd.xlane.f32.xlu0 %v104_v49 }
 0x132   :  { %v106_v51 = vpop.xlane.xlu0 %105 }
 0x133   :  { %v109_v52 = vadd.f32 %v108_v50, %v106_v51 }
 0x135   :  { %v137_v53 = vmul.f32 -1.442695, %v109_v52 }
 0x137   :  { %142 = vpow2.f32 %v137_v53 }
 0x13d   :  { %v143_v54 = vpop.eup %142 }
 0x13e   :  { %v113_v55 = vadd.f32 1.0, %v143_v54 }
 0x140   :  { %144 = vrcp.f32 %v113_v55  ;;  %v125_v59 = vand.u32 2147483648, %v113_v55  ;;  %v123_v61 = vand.u32 2147483647, %v113_v55  ;;  %vm119_vm7 = vweird.f32 %v113_v55 }
 0x142   :  { %v126_v63 = vor.u32 1.1754944e-38, %v125_v59  ;;  %vm124_vm10 = vcmp.eq.f32.partialorder %v123_v61, 8.507059e+37 }
 0x146   :  { %v145_v56 = vpop.eup %144 }
 0x147   :  { %v115_v57 = vmul.f32 %v145_v56, %v113_v55  ;;  %vm120_vm6 = vweird.f32 %v145_v56 }
 0x148   :  { %vm121_vm8 = vmor %vm119_vm7, %vm120_vm6 }
 0x149   :  { %v116_v58 = vsub.f32 1.0, %v115_v57 }
 0x14b   :  { %v117_v60 = vmul.f32 %v145_v56, %v116_v58 }
 0x14d   :  { %v118_v62 = vadd.f32 %v145_v56, %v117_v60 }
 0x14f   :  { %v122_v0 = vsel %vm121_vm8, %v145_v56, %v118_v62 }
 0x150   :  { %v127_v1 = vsel %vm124_vm10, %v126_v63, %v122_v0 }
 0x151   :  { %130 = vst.msk [vmem:[%s208_s5] sm:$0xff] %vm129_vm9, %v127_v1 }

</bundles_post_ra>
